<compile_context>
chip_gen: v6e
topology: v6e:2x2x1
jax: 0.10.0
libtpu: 0.0.40
codegen_flags: <defaults>
</compile_context>

<pallas_src>
import math
import functools

import jax
import jax.numpy as jnp
from jax import lax
from jax.experimental import pallas as pl
from jax.experimental.pallas import tpu as pltpu


# Large finite negative instead of -inf (robust to bf16 mask storage and to
# fully-masked KV tiles in the online softmax); exp() underflows to exactly 0.
MASK_NEG = -1e30


def build_attention_mask(seq_len: int, res_pos: jnp.ndarray,
                         neg=MASK_NEG, dtype=jnp.bfloat16) -> jnp.ndarray:
    """JAX equivalent of the PyTorch `attention_mask` helper.

    res_pos: (H, L); mask[h, i, j] = res_pos[h, i-j] if 0 <= i-j < L else neg.
    Stored in `dtype` (bf16 by default) to halve the HBM stream into kernel B.
    """
    H, L = res_pos.shape
    pos = jnp.arange(seq_len)
    rel = pos[:, None] - pos[None, :]                     # (S, S)
    valid = (rel >= 0) & (rel < L)
    gathered = res_pos[:, jnp.clip(rel, 0, L - 1)]        # (H, S, S)
    return jnp.where(valid[None, :, :], gathered, neg).astype(dtype)


def _layernorm(v, g, b, eps=1e-5):
    mu = jnp.mean(v, axis=-1, keepdims=True)
    var = jnp.mean((v - mu) ** 2, axis=-1, keepdims=True)
    return (v - mu) * lax.rsqrt(var + eps) * g + b


# --------------------------------------------------------------------------
# Kernel A: LayerNorm1 + QKV projection (three separate outputs)
# --------------------------------------------------------------------------
def qkv_proj_kernel(x_ref, ln1_g_ref, ln1_b_ref, wqkv_ref, bqkv_ref,
                    q_ref, k_ref, v_ref, *, compute_dtype):
    E = x_ref.shape[-1]
    x = x_ref[...]                                        # (TQ, E) f32
    xn = _layernorm(x, ln1_g_ref[...], ln1_b_ref[...])    # f32 vector math
    qkv = jnp.dot(xn.astype(compute_dtype), wqkv_ref[...],
                  preferred_element_type=jnp.float32) + bqkv_ref[...]
    # Static lane slices -> three outputs (removes the XLA jnp.split pass).
    q_ref[...] = qkv[:, :E].astype(q_ref.dtype)
    k_ref[...] = qkv[:, E:2 * E].astype(k_ref.dtype)
    v_ref[...] = qkv[:, 2 * E:].astype(v_ref.dtype)


# --------------------------------------------------------------------------
# Kernel B: flash attention (online softmax over KV tiles) + out-proj +
#           residual + LayerNorm2 + MLP + residual
# --------------------------------------------------------------------------
def flash_attn_mlp_kernel(x_ref, q_ref, k_ref, v_ref, mask_ref,
                          wo_ref, bo_ref, ln2_g_ref, ln2_b_ref,
                          w1_ref, b1_ref, w2_ref, b2_ref,
                          o_ref, m_ref, l_ref, acc_ref,
                          *, compute_dtype):
    kv = pl.program_id(2)

    @pl.when(kv == 0)
    def _():
        m_ref[...] = jnp.full_like(m_ref, MASK_NEG)
        l_ref[...] = jnp.zeros_like(l_ref)
        acc_ref[...] = jnp.zeros_like(acc_ref)

    q = q_ref[...]                                        # (H, TQ, hd), scale folded
    k = k_ref[...]                                        # (H, TK, hd)
    v = v_ref[...]                                        # (H, TK, hd)

    # Scores for all heads at once; contraction over hd (batched einsum).
    s = jnp.einsum('hqd,hkd->hqk', q, k,
                   preferred_element_type=jnp.float32)
    s = s + mask_ref[...].astype(jnp.float32)             # bf16 mask -> f32

    # Online softmax update (f32).
    m_prev = m_ref[...]
    m_new = jnp.maximum(m_prev, jnp.max(s, axis=-1, keepdims=True))
    alpha = jnp.exp(m_prev - m_new)
    p = jnp.exp(s - m_new)
    l_ref[...] = alpha * l_ref[...] + jnp.sum(p, axis=-1, keepdims=True)
    acc_ref[...] = alpha * acc_ref[...] + jnp.einsum(
        'hqk,hkd->hqd', p.astype(compute_dtype), v,
        preferred_element_type=jnp.float32)
    m_ref[...] = m_new

    @pl.when(kv == pl.num_programs(2) - 1)
    def _():
        H = q_ref.shape[0]
        # Normalize once on the f32 accumulator (after the PV matmul) instead
        # of scaling the (H, TQ, S) probability slab.
        ctx = (acc_ref[...] * pl.reciprocal(l_ref[...], approx=True)
               ).astype(compute_dtype)                    # (H, TQ, hd)

        # Per-head out-projection accumulated in a single (TQ, E) f32 value
        # (avoids materializing an (H, TQ, E) intermediate).
        attn = jnp.dot(ctx[0], wo_ref[0], preferred_element_type=jnp.float32)
        for h in range(1, H):
            attn = attn + jnp.dot(ctx[h], wo_ref[h],
                                  preferred_element_type=jnp.float32)
        attn = attn + bo_ref[...]

        x = x_ref[...]                                    # (TQ, E) f32 residual
        x1 = x + attn

        # MLP block (vector math in f32, MXU operands in compute_dtype).
        xn2 = _layernorm(x1, ln2_g_ref[...], ln2_b_ref[...])
        h1 = jnp.dot(xn2.astype(compute_dtype), w1_ref[...],
                     preferred_element_type=jnp.float32) + b1_ref[...]
        h1 = jnp.maximum(h1, 0.0)                         # ReLU
        mlp = jnp.dot(h1.astype(compute_dtype), w2_ref[...],
                      preferred_element_type=jnp.float32) + b2_ref[...]
        o_ref[...] = (x1 + mlp).astype(o_ref.dtype)


# --------------------------------------------------------------------------
# Spec / compiler-param helpers
# --------------------------------------------------------------------------
def _const_spec(arr, grid_rank):
    """Full-array spec with constant index map, single-buffered (weights)."""
    nd = arr.ndim
    if grid_rank == 2:
        index_map = lambda b, t, _n=nd: (0,) * _n
    else:
        index_map = lambda b, t, s, _n=nd: (0,) * _n
    return pl.BlockSpec(arr.shape, index_map, pipeline_mode=pl.Buffered(1))


def _default_vmem_limit():
    """~85% of per-core VMEM, capped at 100 MiB (=> <=~56 MiB on v7x)."""
    try:
        cap = pltpu.get_tpu_info().vmem_capacity_bytes
    except Exception:
        cap = 64 * 1024 * 1024
    return int(min(cap * 0.85, 100 * 1024 * 1024))


# --------------------------------------------------------------------------
# Wrappers
# --------------------------------------------------------------------------
def qkv_project(x, prep, *, tile, compute_dtype, vmem_limit):
    B, S, E = x.shape
    weights = (prep["ln1_g"], prep["ln1_b"], prep["wqkv"], prep["bqkv"])
    in_specs = [pl.BlockSpec((pl.Squeezed(), tile, E), lambda b, t: (b, t, 0))]
    in_specs += [_const_spec(w, 2) for w in weights]
    out_spec = pl.BlockSpec((pl.Squeezed(), tile, E), lambda b, t: (b, t, 0))
    out_sds = jax.ShapeDtypeStruct((B, S, E), compute_dtype)
    kernel = functools.partial(qkv_proj_kernel, compute_dtype=compute_dtype)
    return pl.pallas_call(
        kernel,
        out_shape=(out_sds, out_sds, out_sds),
        grid_spec=pltpu.PrefetchScalarGridSpec(
            num_scalar_prefetch=0,
            grid=(B, S // tile),
            in_specs=in_specs,
            out_specs=(out_spec, out_spec, out_spec)),
        compiler_params=pltpu.CompilerParams(
            dimension_semantics=("parallel", "parallel"),
            vmem_limit_bytes=vmem_limit),
    )(x, *weights)


def attn_mlp(x, q, k, v, mask, prep, *, tile_q, tile_kv, compute_dtype,
             vmem_limit):
    B, S, E = x.shape
    H, hd = q.shape[1], q.shape[3]
    weights = (prep["wo_h"], prep["bo"], prep["ln2_g"], prep["ln2_b"],
               prep["w1"], prep["b1"], prep["w2"], prep["b2"])
    in_specs = [
        pl.BlockSpec((pl.Squeezed(), tile_q, E), lambda b, t, s: (b, t, 0)),        # x
        pl.BlockSpec((pl.Squeezed(), H, tile_q, hd), lambda b, t, s: (b, 0, t, 0)),  # q tile
        pl.BlockSpec((pl.Squeezed(), H, tile_kv, hd), lambda b, t, s: (b, 0, s, 0)),  # k tile
        pl.BlockSpec((pl.Squeezed(), H, tile_kv, hd), lambda b, t, s: (b, 0, s, 0)),  # v tile
        pl.BlockSpec((H, tile_q, tile_kv), lambda b, t, s: (0, t, s)),               # mask tile
    ]
    in_specs += [_const_spec(w, 3) for w in weights]
    out_spec = pl.BlockSpec((pl.Squeezed(), tile_q, E), lambda b, t, s: (b, t, 0))
    kernel = functools.partial(flash_attn_mlp_kernel, compute_dtype=compute_dtype)
    return pl.pallas_call(
        kernel,
        out_shape=jax.ShapeDtypeStruct((B, S, E), x.dtype),
        grid_spec=pltpu.PrefetchScalarGridSpec(
            num_scalar_prefetch=0,
            grid=(B, S // tile_q, S // tile_kv),          # KV reduction axis last
            in_specs=in_specs,
            out_specs=out_spec,
            scratch_shapes=[
                pltpu.VMEM((H, tile_q, 1), jnp.float32),   # running max m
                pltpu.VMEM((H, tile_q, 1), jnp.float32),   # running sum l
                pltpu.VMEM((H, tile_q, hd), jnp.float32),  # unnormalized ctx acc
            ]),
        compiler_params=pltpu.CompilerParams(
            dimension_semantics=("parallel", "parallel", "arbitrary"),
            vmem_limit_bytes=vmem_limit),
    )(x, q, k, v, mask, *weights)


def transformer_layer(x, prep, *, num_heads, compute_dtype=jnp.bfloat16,
                      tile_q=256, tile_kv=256, mask_dtype=jnp.bfloat16,
                      vmem_limit=None):
    B, S, E = x.shape
    hd = E // num_heads
    tile_q = min(tile_q, S)
    tile_kv = min(tile_kv, S)
    assert S % tile_q == 0 and S % tile_kv == 0
    assert tile_q == S or tile_q % 8 == 0
    # the mask tile's last dim must be lane-aligned (or span the full key axis)
    assert tile_kv == S or tile_kv % 128 == 0, \
        "tile_kv must equal seq_len or be a multiple of 128"
    if vmem_limit is None:
        vmem_limit = _default_vmem_limit()

    mask = build_attention_mask(S, prep["res_pos"], dtype=mask_dtype)  # (H,S,S) bf16

    q, k, v = qkv_project(x, prep, tile=tile_q, compute_dtype=compute_dtype,
                          vmem_limit=vmem_limit)

    # Wrapper-side layout plumbing: head-major lane-dense slabs so kernel B
    # never slices / transposes / concatenates along the head axis.
    def to_heads(t):
        return t.reshape(B, S, num_heads, hd).transpose(0, 2, 1, 3)

    return attn_mlp(x, to_heads(q), to_heads(k), to_heads(v), mask, prep,
                    tile_q=tile_q, tile_kv=tile_kv,
                    compute_dtype=compute_dtype, vmem_limit=vmem_limit)


# --------------------------------------------------------------------------
# Parameters
# --------------------------------------------------------------------------
def init_params(key, embed_dim, num_heads, res_pos_length):
    """Deterministic synthetic parameter init (shapes match the nn.Module)."""
    E = embed_dim
    ks = jax.random.split(key, 9)

    def rnd(k, shape, scale=0.1):
        return jax.random.normal(k, shape, jnp.float32) * scale

    return dict(
        res_pos=rnd(ks[0], (num_heads, res_pos_length)),  # nn.Parameter (H, L)
        ln1_g=jnp.ones((1, E), jnp.float32),
        ln1_b=jnp.zeros((1, E), jnp.float32),
        wqkv=rnd(ks[1], (E, 3 * E)),                      # in_proj_weight.T
        bqkv=rnd(ks[2], (1, 3 * E), 0.01),
        wo=rnd(ks[3], (E, E)),                            # out_proj.weight.T
        bo=rnd(ks[4], (1, E), 0.01),
        ln2_g=jnp.ones((1, E), jnp.float32),
        ln2_b=jnp.zeros((1, E), jnp.float32),
        w1=rnd(ks[5], (E, 4 * E)),
        b1=rnd(ks[6], (1, 4 * E), 0.01),
        w2=rnd(ks[7], (4 * E, E)),
        b2=rnd(ks[8], (1, E), 0.01),
    )


def prepare_params(params, num_heads, compute_dtype):
    """One-time prep: fold q-scale, head-major wo, cast MXU weights."""
    E = params["wo"].shape[0]
    hd = E // num_heads
    scale = 1.0 / math.sqrt(hd)
    wqkv = params["wqkv"].at[:, :E].multiply(scale)       # fold 1/sqrt(hd) into q
    bqkv = params["bqkv"].at[:, :E].multiply(scale)
    return dict(
        res_pos=params["res_pos"],
        ln1_g=params["ln1_g"], ln1_b=params["ln1_b"],
        wqkv=wqkv.astype(compute_dtype), bqkv=bqkv,       # biases stay f32
        wo_h=params["wo"].reshape(num_heads, hd, E).astype(compute_dtype),
        bo=params["bo"],
        ln2_g=params["ln2_g"], ln2_b=params["ln2_b"],
        w1=params["w1"].astype(compute_dtype), b1=params["b1"],
        w2=params["w2"].astype(compute_dtype), b2=params["b2"],
    )


# --------------------------------------------------------------------------
# Pure-JAX f32 reference (mirrors the PyTorch forward)
# --------------------------------------------------------------------------
def reference(x, params, num_heads):
    B, S, E = x.shape
    HD = E // num_heads
    mask = build_attention_mask(S, params["res_pos"], neg=float('-inf'),
                                dtype=jnp.float32)

    def ln(v, g, b):
        mu = v.mean(-1, keepdims=True)
        var = ((v - mu) ** 2).mean(-1, keepdims=True)
        return (v - mu) / jnp.sqrt(var + 1e-5) * g + b

    xn = ln(x, params["ln1_g"], params["ln1_b"])
    qkv = xn @ params["wqkv"] + params["bqkv"]
    q, k, v = jnp.split(qkv, 3, axis=-1)

    def heads(t):
        return t.reshape(B, S, num_heads, HD).transpose(0, 2, 1, 3)

    q, k, v = heads(q), heads(k), heads(v)
    s = jnp.einsum("bhqd,bhkd->bhqk", q / math.sqrt(HD), k) + mask[None]
    p = jax.nn.softmax(s, axis=-1)
    a = jnp.einsum("bhqk,bhkd->bhqd", p, v).transpose(0, 2, 1, 3).reshape(B, S, E)
    a = a @ params["wo"] + params["bo"]
    x1 = x + a
    xn2 = ln(x1, params["ln2_g"], params["ln2_b"])
    h = jax.nn.relu(xn2 @ params["w1"] + params["b1"])
    return x1 + h @ params["w2"] + params["b2"]


if __name__ == "__main__":
    # Config 1: tiny shapes (single KV step).  Config 2: exercises the
    # multi-step online softmax with lane-aligned (128) KV tiles, including
    # fully-masked tiles.  Real deployments should use E / head_dim that are
    # multiples of 128 so the MXU lanes are filled.
    configs = [
        dict(B=2, S=32, E=32, H=4, L=8, tile_q=16, tile_kv=32),
        dict(B=2, S=256, E=128, H=4, L=64, tile_q=128, tile_kv=128),
    ]

    key = jax.random.PRNGKey(0)
    for cfg in configs:
        B, S, E, H, L = cfg["B"], cfg["S"], cfg["E"], cfg["H"], cfg["L"]
        key, kx, kp = jax.random.split(key, 3)
        x = jax.random.normal(kx, (B, S, E), jnp.float32)
        params = init_params(kp, E, H, L)
        ref = reference(x, params, H)

        for cdtype, tol in ((jnp.float32, 1e-2), (jnp.bfloat16, 6e-2)):
            prep = prepare_params(params, H, cdtype)
            out = transformer_layer(x, prep, num_heads=H, compute_dtype=cdtype,
                                    tile_q=cfg["tile_q"], tile_kv=cfg["tile_kv"])
            out = jax.block_until_ready(out)
            assert out.shape == (B, S, E)
            err = float(jnp.max(jnp.abs(out - ref)))
            assert jnp.allclose(out, ref, atol=tol, rtol=tol), (
                f"cfg={cfg} {cdtype.__name__}: max abs err = {err}")
    print("KERNEL_OK")
</pallas_src>

<mosaic_0001>
module attributes {stable_mosaic.version = 11 : i64} {
  func.func @qkv_proj_kernel(%arg0: i32, %arg1: i32, %arg2: memref<1x16x32xf32, #tpu.memory_space<vmem>>, %arg3: memref<1x32xf32, #tpu.memory_space<vmem>>, %arg4: memref<1x32xf32, #tpu.memory_space<vmem>>, %arg5: memref<32x96xf32, #tpu.memory_space<vmem>>, %arg6: memref<1x96xf32, #tpu.memory_space<vmem>>, %arg7: memref<1x16x32xf32, #tpu.memory_space<vmem>>, %arg8: memref<1x16x32xf32, #tpu.memory_space<vmem>>, %arg9: memref<1x16x32xf32, #tpu.memory_space<vmem>>) attributes {dimension_semantics = [#tpu.dimension_semantics<parallel>, #tpu.dimension_semantics<parallel>], iteration_bounds = array<i64: 2, 2>, scalar_prefetch = 0 : i64, scratch_operands = 0 : i64, tpu.core_type = #tpu.core_type<tc>, window_params = [{transform_indices = @transform_0, window_bounds = array<i64: 1, 16, 32>}, {pipeline_mode = #tpu.pipeline_mode<synchronous>, transform_indices = @transform_1, window_bounds = array<i64: 1, 32>}, {pipeline_mode = #tpu.pipeline_mode<synchronous>, transform_indices = @transform_2, window_bounds = array<i64: 1, 32>}, {pipeline_mode = #tpu.pipeline_mode<synchronous>, transform_indices = @transform_3, window_bounds = array<i64: 32, 96>}, {pipeline_mode = #tpu.pipeline_mode<synchronous>, transform_indices = @transform_4, window_bounds = array<i64: 1, 96>}, {transform_indices = @transform_5, window_bounds = array<i64: 1, 16, 32>}, {transform_indices = @transform_6, window_bounds = array<i64: 1, 16, 32>}, {transform_indices = @transform_7, window_bounds = array<i64: 1, 16, 32>}]} {
    %c0 = arith.constant 0 : index
    %c0_0 = arith.constant 0 : index
    %c0_1 = arith.constant 0 : index
    %0 = vector.load %arg2[%c0, %c0_0, %c0_1] : memref<1x16x32xf32, #tpu.memory_space<vmem>>, vector<1x16x32xf32>
    %1 = vector.shape_cast %0 : vector<1x16x32xf32> to vector<16x32xf32>
    %c0_2 = arith.constant 0 : index
    %c0_3 = arith.constant 0 : index
    %2 = vector.load %arg3[%c0_2, %c0_3] : memref<1x32xf32, #tpu.memory_space<vmem>>, vector<1x32xf32>
    %c0_4 = arith.constant 0 : index
    %c0_5 = arith.constant 0 : index
    %3 = vector.load %arg4[%c0_4, %c0_5] : memref<1x32xf32, #tpu.memory_space<vmem>>, vector<1x32xf32>
    %cst = arith.constant dense<0.000000e+00> : vector<16xf32>
    %4 = vector.multi_reduction <add>, %1, %cst [1] : vector<16x32xf32> to vector<16xf32>
    %5 = vector.shape_cast %4 : vector<16xf32> to vector<16x1xf32>
    %cst_6 = arith.constant 3.200000e+01 : f32
    %6 = vector.broadcast %cst_6 : f32 to vector<16x1xf32>
    %7 = arith.divf %5, %6 : vector<16x1xf32>
    %8 = vector.broadcast %7 : vector<16x1xf32> to vector<16x32xf32>
    %9 = arith.subf %1, %8 : vector<16x32xf32>
    %10 = arith.mulf %9, %9 : vector<16x32xf32>
    %cst_7 = arith.constant dense<0.000000e+00> : vector<16xf32>
    %11 = vector.multi_reduction <add>, %10, %cst_7 [1] : vector<16x32xf32> to vector<16xf32>
    %12 = vector.shape_cast %11 : vector<16xf32> to vector<16x1xf32>
    %cst_8 = arith.constant 3.200000e+01 : f32
    %13 = vector.broadcast %cst_8 : f32 to vector<16x1xf32>
    %14 = arith.divf %12, %13 : vector<16x1xf32>
    %15 = vector.broadcast %7 : vector<16x1xf32> to vector<16x32xf32>
    %16 = arith.subf %1, %15 : vector<16x32xf32>
    %cst_9 = arith.constant 9.99999974E-6 : f32
    %17 = vector.broadcast %cst_9 : f32 to vector<16x1xf32>
    %18 = arith.addf %14, %17 : vector<16x1xf32>
    %19 = math.rsqrt %18 : vector<16x1xf32>
    %20 = vector.broadcast %19 : vector<16x1xf32> to vector<16x32xf32>
    %21 = arith.mulf %16, %20 : vector<16x32xf32>
    %22 = vector.broadcast %2 : vector<1x32xf32> to vector<16x32xf32>
    %23 = arith.mulf %21, %22 : vector<16x32xf32>
    %24 = vector.broadcast %3 : vector<1x32xf32> to vector<16x32xf32>
    %25 = arith.addf %23, %24 : vector<16x32xf32>
    %c0_10 = arith.constant 0 : index
    %c0_11 = arith.constant 0 : index
    %26 = vector.load %arg5[%c0_10, %c0_11] : memref<32x96xf32, #tpu.memory_space<vmem>>, vector<32x96xf32>
    %cst_12 = arith.constant dense<0.000000e+00> : vector<16x96xf32>
    %27 = tpu.matmul %25, %26, %cst_12 {dimension_numbers = #tpu.dot_dimension_numbers<[1], [0], [0], [1], [0, 0, 1, 1], [], []>} : vector<16x32xf32>, vector<32x96xf32>, vector<16x96xf32> -> vector<16x96xf32>
    %c0_13 = arith.constant 0 : index
    %c0_14 = arith.constant 0 : index
    %28 = vector.load %arg6[%c0_13, %c0_14] : memref<1x96xf32, #tpu.memory_space<vmem>>, vector<1x96xf32>
    %29 = vector.broadcast %28 : vector<1x96xf32> to vector<16x96xf32>
    %30 = arith.addf %27, %29 : vector<16x96xf32>
    %31 = vector.extract_strided_slice %30 {offsets = [0, 0], sizes = [16, 32], strides = [1, 1]} : vector<16x96xf32> to vector<16x32xf32>
    %c0_15 = arith.constant 0 : index
    %c0_16 = arith.constant 0 : index
    %c0_17 = arith.constant 0 : index
    %32 = vector.load %arg7[%c0_15, %c0_16, %c0_17] : memref<1x16x32xf32, #tpu.memory_space<vmem>>, vector<1x16x32xf32>
    %33 = vector.shape_cast %32 : vector<1x16x32xf32> to vector<16x32xf32>
    %34 = vector.shape_cast %31 : vector<16x32xf32> to vector<1x16x32xf32>
    tpu.vector_store %arg7[%c0_15, %c0_16, %c0_17], %34 {strides = array<i32>} : memref<1x16x32xf32, #tpu.memory_space<vmem>>, vector<1x16x32xf32>,
    %35 = vector.extract_strided_slice %30 {offsets = [0, 32], sizes = [16, 32], strides = [1, 1]} : vector<16x96xf32> to vector<16x32xf32>
    %c0_18 = arith.constant 0 : index
    %c0_19 = arith.constant 0 : index
    %c0_20 = arith.constant 0 : index
    %36 = vector.load %arg8[%c0_18, %c0_19, %c0_20] : memref<1x16x32xf32, #tpu.memory_space<vmem>>, vector<1x16x32xf32>
    %37 = vector.shape_cast %36 : vector<1x16x32xf32> to vector<16x32xf32>
    %38 = vector.shape_cast %35 : vector<16x32xf32> to vector<1x16x32xf32>
    tpu.vector_store %arg8[%c0_18, %c0_19, %c0_20], %38 {strides = array<i32>} : memref<1x16x32xf32, #tpu.memory_space<vmem>>, vector<1x16x32xf32>,
    %39 = vector.extract_strided_slice %30 {offsets = [0, 64], sizes = [16, 32], strides = [1, 1]} : vector<16x96xf32> to vector<16x32xf32>
    %c0_21 = arith.constant 0 : index
    %c0_22 = arith.constant 0 : index
    %c0_23 = arith.constant 0 : index
    %40 = vector.load %arg9[%c0_21, %c0_22, %c0_23] : memref<1x16x32xf32, #tpu.memory_space<vmem>>, vector<1x16x32xf32>
    %41 = vector.shape_cast %40 : vector<1x16x32xf32> to vector<16x32xf32>
    %42 = vector.shape_cast %39 : vector<16x32xf32> to vector<1x16x32xf32>
    tpu.vector_store %arg9[%c0_21, %c0_22, %c0_23], %42 {strides = array<i32>} : memref<1x16x32xf32, #tpu.memory_space<vmem>>, vector<1x16x32xf32>,
    return
  }
  func.func @transform_0(%arg0: i32, %arg1: i32) -> (i32, i32, i32) {
    %c0_i32 = arith.constant 0 : i32
    %c0_i32_0 = arith.constant 0 : i32
    return %arg0, %arg1, %c0_i32 : i32, i32, i32
  }
  func.func @transform_1(%arg0: i32, %arg1: i32) -> (i32, i32) {
    %c0_i32 = arith.constant 0 : i32
    %c0_i32_0 = arith.constant 0 : i32
    %c0_i32_1 = arith.constant 0 : i32
    return %c0_i32, %c0_i32_0 : i32, i32
  }
  func.func @transform_2(%arg0: i32, %arg1: i32) -> (i32, i32) {
    %c0_i32 = arith.constant 0 : i32
    %c0_i32_0 = arith.constant 0 : i32
    %c0_i32_1 = arith.constant 0 : i32
    return %c0_i32, %c0_i32_0 : i32, i32
  }
  func.func @transform_3(%arg0: i32, %arg1: i32) -> (i32, i32) {
    %c0_i32 = arith.constant 0 : i32
    %c0_i32_0 = arith.constant 0 : i32
    %c0_i32_1 = arith.constant 0 : i32
    return %c0_i32, %c0_i32_0 : i32, i32
  }
  func.func @transform_4(%arg0: i32, %arg1: i32) -> (i32, i32) {
    %c0_i32 = arith.constant 0 : i32
    %c0_i32_0 = arith.constant 0 : i32
    %c0_i32_1 = arith.constant 0 : i32
    return %c0_i32, %c0_i32_0 : i32, i32
  }
  func.func @transform_5(%arg0: i32, %arg1: i32) -> (i32, i32, i32) {
    %c0_i32 = arith.constant 0 : i32
    %c0_i32_0 = arith.constant 0 : i32
    return %arg0, %arg1, %c0_i32 : i32, i32, i32
  }
  func.func @transform_6(%arg0: i32, %arg1: i32) -> (i32, i32, i32) {
    %c0_i32 = arith.constant 0 : i32
    %c0_i32_0 = arith.constant 0 : i32
    return %arg0, %arg1, %c0_i32 : i32, i32, i32
  }
  func.func @transform_7(%arg0: i32, %arg1: i32) -> (i32, i32, i32) {
    %c0_i32 = arith.constant 0 : i32
    %c0_i32_0 = arith.constant 0 : i32
    return %arg0, %arg1, %c0_i32 : i32, i32, i32
  }
}

</mosaic_0001>

<bundles_post_ra>
// kernel: tpu_custom_call.1
= control target key start
LH: loop header
LB: loop body
LE: loop exit
PB: predicated region body
PF: predicated region fallthrough
CT: control target
= control target key end

     0   :  { %s1478_s0 = inlined_call_operand.hbm [shape: f32[2,32,32], index: 0, kind: input, shape index: {}]   ;;  %s1479_s1 = inlined_call_operand.vmem [shape: f32[1,32], index: 1, kind: input, shape index: {}]   ;;  %s1480_s2 = inlined_call_operand.vmem [shape: f32[1,32], index: 2, kind: input, shape index: {}]   ;;  %s1481_s3 = inlined_call_operand.hbm [shape: f32[32,96], index: 3, kind: input, shape index: {}]   ;;  %s1482_s4 = inlined_call_operand.vmem [shape: f32[1,96], index: 4, kind: input, shape index: {}]   ;;  %s1483_s5 = inlined_call_operand.hbm [shape: f32[2,32,32], index: 5, kind: output, shape index: {0}]   ;;  %s1484_s6 = inlined_call_operand.hbm [shape: f32[2,32,32], index: 6, kind: output, shape index: {1}]   ;;  %s1485_s7 = inlined_call_operand.hbm [shape: f32[2,32,32], index: 7, kind: output, shape index: {2}]  }
   0x1   :  { %1498 = sst [smem:[#allocation20_spill]] %s1481_s3 }
   0x2   :  { %1499 = sst [smem:[#allocation21_spill]] %s1483_s5 }
   0x3   :  { %1500 = sst [smem:[#allocation22_spill]] %s1484_s6 }
   0x4   :  { %1501 = sst [smem:[#allocation23_spill]] %s1485_s7 }
   0x5   :  { %13 = vsyncpa [#allocation3], 0 }
   0x6   :  { %15 = vsyncpa [#allocation3 + $0x1], 0 }
   0x7   :  { %16 = vsyncpa [#allocation6], 0 }
   0x8   :  { %17 = vsyncpa [#allocation4], 0 }
   0x9   :  { %19 = vsyncpa [#allocation4 + $0x1], 0 }
   0xa   :  { %20 = vsyncpa [#allocation9], 0 }
   0xb   :  { %22 = vsyncpa [#allocation9 + $0x1], 0  ;;  %s1168_s24 = smov 0   ;;  %s1170_s25 = smov 0  }
   0xc   :  { %s1172_s26 = smov 0   ;;  %s1174_s27 = smov 0  }
   0xd   :  { %s1176_s28 = smov 0   ;;  %s1178_s29 = smov 0  }
   0xe   :  { %s1180_s30 = smov 0   ;;  %s1182_s8 = smov 0  }
   0xf LB: > { %1502 = sst [smem:[#allocation15_spill]] %s1087_s24  ;;  %s1209_s9 = sadd.s32 4294967295, %s1115_s8   ;;  %s1115_s8 = sphi %s1182_s8, %s28_s8   ;;  %s1111_s30 = sphi %s1180_s30, %s1532_s30   ;;  %s1107_s29 = sphi %s1178_s29, %s1527_s29   ;;  %s1103_s28 = sphi %s1176_s28, %s1531_s28   ;;  %s1099_s27 = sphi %s1174_s27, %s1526_s27   ;;  %s1095_s26 = sphi %s1172_s26, %s1530_s26   ;;  %s1091_s25 = sphi %s1170_s25, %s1529_s25   ;;  %s1087_s24 = sphi %s1168_s24, %s1528_s24  }
  0x10   : > { %1503 = sst [smem:[#allocation16_spill]] %s1107_s29  ;;  %s1486_s10 = sadd.s32 4294967294, %s1115_s8  }
  0x11   : > { %p62_p0 = scmp.ne.s32.totalorder %s1091_s25, %s1087_s24  ;;  %p63_p1 = scmp.eq.s32.totalorder %s1209_s9, 0 }
  0x12   : > { %p178_p3 = scmp.eq.s32.totalorder %s1486_s10, 3  ;;  %p747_p5 = scmp.ge.s32.totalorder %s1115_s8, 1 }
  0x13   : > { %p1220_p4 = por %p63_p1, %p62_p0  ;;  %p241_p7 = scmp.lt.s32.totalorder %s1115_s8, 5 }
  0x14   : > { %p1225_p6 = por %p178_p3, %p62_p0  ;;  %s1117_s14 = smov [#allocation5]  }
  0x15   : > { %p1230_p8 = pnand %p747_p5, %p241_p7  ;;  %s259_s15 = sshll.u32 %s1117_s14, 4  ;;  %s260_s15 = int_to_ptr.vmem [resolvable:$true] %s259_s15 }
  0x16   : > { %s1505_s12 = scalar_select %p1225_p6, 1, 0 }
  0x17   : > { %p808_p9 = pneg %p1230_p8  ;;  %s916_s16 = scalar_lea.vmem %s260_s15, 512 }
  0x18   : > { %1506 = sst [smem:[#allocation17_spill]] %s1505_s12  ;;  %p917_p12 = scmp.ne.s32.totalorder %s260_s15, %s916_s16 }
  0x19   : > { %p809_p10 = pnand %p808_p9, %p63_p1  ;;  %p924_p3 = scmp.lt.s32.totalorder %s260_s15, %s260_s15 }
  0x1a   : > { %p925_p2 = scmp.lt.s32.totalorder %s916_s16, %s916_s16 }
  0x1b   : > { %p907_p11 = pneg %p809_p10 }
  0x1c   : > { %p926_p6 = por %p925_p2, %p924_p3 }
  0x1d   : > { %p919_p13 = pnand %p917_p12, %p907_p11 }
  0x1f   : > { %p920_p0 = pneg %p919_p13 }
  0x21   : > { %p927_p5 = pnand %p926_p6, %p920_p0 }
  0x23   : > { %930 = shalt.err (!%p927_p5)
}
  0x24   : > { %s1487_s17 = smov 128   ;;  %s1488_s18 = smov 8  }
  0x25   : > { %s1508_s3 = sld [smem:[#allocation20_spill]]  ;;  %s37_s21 = sadd.s32 1, %s1107_s29 }
  0x26   : > { %p38_p2 = scmp.ge.s32.totalorder %s37_s21, 2  ;;  %s40_s22 = sadd.s32 1, %s1111_s30 }
  0x27   : > { %s49_s23 = sadd.s32 1, %s1095_s26  ;;  %p56_p6 = scmp.ne.s32.totalorder %s1095_s26, %s1091_s25 }
  0x28   : > { %s1534_s21 = smov (%p38_p2, %s37_s21), 0  ;;  %s1536_s22 = smov (!%p38_p2, %s40_s22), %s1111_s30 }
  0x29   : > { %1509 = sst [smem:[#allocation18_spill]] %s1534_s21  ;;  %s45_s14 = ssub.s32 %s1107_s29, %s1534_s21 }
  0x2a   : > { %p57_p7 = scmp.eq.s32.totalorder %s1115_s8, 0  ;;  %p42_p9 = scmp.ge.s32.totalorder %s1536_s22, 2 }
  0x2b   : > { %811 = dma.hbm_to_vmem [thread:$0]  (!%p809_p10), %s1508_s3, 512, %s260_s15, [#allocation6], %s1487_s17, %s1487_s17, %s1488_s18  }
  0x2c   : > { %p1510_p11 = scmp.eq.s32.totalorder %s1209_s9, 3  ;;  %p1261_p10 = por %p57_p7, %p56_p6 }
  0x2d   : > { %p827_p13 = scmp.lt.s32.totalorder %s1115_s8, 4  ;;  %s1538_s22 = smov (%p42_p9, %s1536_s22), 0 }
  0x2e   : > { %p1257_p12 = por %p1510_p11, %p56_p6  ;;  %s276_s19 = sand.u32 1, %s1095_s26  }
  0x2f   : > { %s751_s20 = sshll.u32 %s1107_s29, 1  ;;  %s44_s10 = ssub.s32 %s1111_s30, %s1538_s22 }
  0x30   : > { %s1511_s16 = scalar_select %p1257_p12, 1, 0 }
  0x31   : > { %s46_s17 = sor.u32 %s45_s14, %s44_s10  ;;  %s750_s18 = sshll.u32 %s276_s19, 4 }
  0x32   : > { %1512 = sst [smem:[#allocation19_spill]] %s1511_s16  ;;  %p47_p0 = scmp.eq.s32.totalorder %s46_s17, 0 }
  0x33   : > { %s752_s3 = sshll.u32 %s1111_s30, 2  ;;  %s280_s21 = scalar_lea.vmem [#allocation2], %s750_s18 }
  0x34   : > { %s289_s12 = sshll.u32 %s280_s21, 4  ;;  %s286_s7 = sadd.s32 %s752_s3, %s751_s20  ;;  %s290_s12 = int_to_ptr.vmem [resolvable:$true] %s289_s12 }
  0x35   : > { %s1274_s24 = scalar_select %p47_p0, %s1095_s26, %s49_s23  }
  0x36   : > { %s753_s6 = sshll.u32 %s286_s7, 7  ;;  %p1280_p3 = pnand %p827_p13, %p1261_p10 }
  0x37   : > { %s288_s10 = scalar_lea.hbm %s1478_s0, %s753_s6  ;;  %s277_s17 = scalar_lea.sflag [#allocation3], %s276_s19 }
  0x38   : > { %p933_p5 = pneg %p1280_p3  ;;  %s944_s18 = scalar_lea.vmem %s290_s12, 256 }
  0x39   : > { %p945_p2 = scmp.ne.s32.totalorder %s290_s12, %s944_s18  ;;  %s1120_s3 = smov [#allocation2]  }
  0x3a   : > { %s949_s7 = sshll.u32 %s1120_s3, 4  ;;  %s950_s7 = int_to_ptr.vmem [resolvable:$false] %s949_s7 }
  0x3b   : > { %p947_p6 = pnand %p945_p2, %p933_p5  ;;  %s951_s21 = scalar_lea.vmem %s950_s7, 512 }
  0x3c   : > { %p952_p9 = scmp.lt.s32.totalorder %s290_s12, %s950_s7  ;;  %p953_p11 = scmp.lt.s32.totalorder %s951_s21, %s944_s18 }
  0x3d   : > { %p948_p7 = pneg %p947_p6 }
  0x3e   : > { %p954_p10 = por %p953_p11, %p952_p9 }
  0x40   : > { %p955_p13 = pnand %p954_p10, %p948_p7 }
  0x42   : > { %958 = shalt.err (!%p955_p13)
}
  0x43   : > { %s1515_s29 = smov 8   ;;  %s1516_s6 = smov 128  }
  0x44   : > { %815 = dma.hbm_to_vmem [thread:$0]  (!%p1280_p3), %s288_s10, 256, %s290_s12, %s277_s17, %s1516_s6, %s1516_s6, %s1515_s29  }
  0x45   : > { %301 = sbr.rel (%p1230_p8) target bundleno = 751 (0x2ef), region = 40  ;;  %s1297_s23 = sand.u32 (!%p1230_p8), 1, %s1091_s25  }
  0x46   : > { %s1300_s14 = sshll.u32 (!%p1230_p8), %s1297_s23, 4  ;;  %s304_s16 = scalar_lea.sflag (!%p1230_p8), [#allocation3], %s1297_s23 }
  0x47   : > { %s307_s15 = scalar_lea.vmem (!%p1230_p8), [#allocation2], %s1300_s14 }
  0x4a   : > { %1070 = dma.done.wait (%p1220_p4), %s304_s16, 256  }
  0x4b   : > { %1072 = vsyncadd (%p1220_p4), %s304_s16, 4294967040 }
  0x4c   : > { %1074 = dma.done.wait (%p63_p1), [#allocation6], 512  }
  0x4d   : > { %1076 = vsyncadd (%p63_p1), [#allocation6], 4294966784  ;;  %vm360_vm0 = vcmask 261120   ;;  %v356_v0 = vld [vmem:[%s307_s15] sm:$0xff]  ;;  %v357_v1 = vld [vmem:[%s307_s15 + $0x8] sm:$0xff]  ;;  %s768_s19 = sshll.u32 %s1099_s27, 1 }
  0x4e   : > { %v361_v2 = vsel %vm360_vm0, %v356_v0, 0.0  ;;  %v364_v3 = vsel %vm360_vm0, %v357_v1, 0.0  ;;  %v407_v14 = vld [vmem:[#allocation5 + $0x18] sm:$0xff]  ;;  %v406_v15 = vld [vmem:[#allocation5 + $0x10] sm:$0xff]  ;;  %v405_v16 = vld [vmem:[#allocation5 + $0x8] sm:$0xff]  ;;  %s769_s20 = sshll.u32 %s1103_s28, 2 }
  0x4f   : > { %362 = vadd.xlane.f32.xlu0 %v361_v2  ;;  %785 = vmatprep.subr.mxu0 %v407_v14  ;;  %v404_v17 = vld [vmem:[#allocation5] sm:$0xff]  ;;  %s539_s10 = sadd.s32 %s769_s20, %s768_s19  ;;  %s337_s3 = scalar_lea.vmem [#allocation7], %s1300_s14 }
  0x50   : > { %786 = vmatpush3.msra.mxu0 %v407_v14  ;;  %v760_v25 = vld [vmem:[%s1479_s1] ss:$0 sm:$0xff]  ;;  %s542_s7 = sshll.u32 %s337_s3, 4  ;;  %s1330_s29 = sshll.u32 %s539_s10, 7  ;;  %s1332_s7 = int_to_ptr.vmem [resolvable:$true] %s542_s7 }
  0x51   : > { %787 = vmatprep.subr.mxu0 %v406_v15  ;;  %v761_v27 = vld [vmem:[%s1480_s2] ss:$0 sm:$0xff]  ;;  %s1121_s27 = smov 96   ;;  %s1518_s16 = sld [smem:[#allocation21_spill]] }
  0x52   : > { %788 = vmatpush3.msra.mxu0 %v406_v15  ;;  %v762_v34 = vld [vmem:[%s1482_s4] ss:$0 sm:$0xff]  ;;  %s517_s5 = scalar_lea.sflag [#allocation4], %s1297_s23  ;;  %s959_s11 = scalar_lea.vmem %s1332_s7, 256 }
  0x53   : > { %365 = vadd.xlane.f32.xlu0 %v364_v3  ;;  %789 = vmatprep.subr.mxu0 %v405_v16  ;;  %p960_p1 = scmp.ne.s32.totalorder %s1332_s7, %s959_s11  ;;  %s1122_s12 = smov [#allocation7]  }
  0x54   : > { %790 = vmatpush3.msra.mxu0 %v405_v16  ;;  %s963_s13 = sshll.u32 %s1122_s12, 4  ;;  %s964_s13 = int_to_ptr.vmem [resolvable:$false] %s963_s13 }
  0x55   : > { %791 = vmatprep.subr.mxu0 %v404_v17  ;;  %p961_p4 = pnand %p960_p1, %p1257_p12  ;;  %s965_s19 = scalar_lea.vmem %s964_s13, 512 }
  0x56   : > { %792 = vmatpush3.msra.mxu0 %v404_v17  ;;  %p966_p0 = scmp.lt.s32.totalorder %s1332_s7, %s964_s13  ;;  %p967_p3 = scmp.lt.s32.totalorder %s965_s19, %s959_s11 }
  0x57   : > { %s1339_s15 = scalar_lea.hbm %s1518_s16, %s1330_s29  ;;  %p962_p8 = pneg %p961_p4 }
  0x58   : > { %p968_p5 = por %p967_p3, %p966_p0 }
  0x5a   : > { %p969_p2 = pnand %p968_p5, %p962_p8 }
  0xd8   : > { %v363_v4 = vpop.xlane.xlu0 %362 }
  0xd9   : > { %v368_v5 = vmul.f32 0.03125, %v363_v4 }
  0xdb   : > { %v370_v6 = vsub.f32 %v356_v0, %v368_v5 }
  0xdc   : > { %v366_v7 = vpop.xlane.xlu0 %365 }
  0xdd   : > { %v369_v8 = vmul.f32 0.03125, %v366_v7  ;;  %v372_v9 = vmul.f32 %v370_v6, %v370_v6 }
  0xdf   : > { %v371_v10 = vsub.f32 %v357_v1, %v369_v8  ;;  %v374_v11 = vsel %vm360_vm0, %v372_v9, 0.0 }
  0xe0   : > { %375 = vadd.xlane.f32.xlu1 %v374_v11 }
  0xe1   : > { %v373_v12 = vmul.f32 %v371_v10, %v371_v10 }
  0xe3   : > { %v377_v13 = vsel %vm360_vm0, %v373_v12, 0.0 }
  0xe4   : > { %378 = vadd.xlane.f32.xlu1 %v377_v13 }
 0x169   : > { %v376_v18 = vpop.xlane.xlu1 %375 }
 0x16a   : > { %v380_v19 = vmul.f32 0.03125, %v376_v18 }
 0x16c   : > { %v382_v20 = vadd.f32 1e-05, %v380_v19 }
 0x16d   : > { %v379_v21 = vpop.xlane.xlu1 %378 }
 0x16e   : > { %901 = vrsqrt.f32 %v382_v20  ;;  %v381_v22 = vmul.f32 0.03125, %v379_v21 }
 0x170   : > { %v383_v23 = vadd.f32 1e-05, %v381_v22 }
 0x172   : > { %903 = vrsqrt.f32 %v383_v23 }
 0x17b   : > { %v902_v24 = vpop.eup %901 }
 0x17c   : > { %v386_v26 = vmul.f32 %v902_v24, %v370_v6 }
 0x17e   : > { %v394_v28 = vmul.f32 %v760_v25, %v386_v26 }
 0x17f   : > { %v904_v29 = vpop.eup %903 }
 0x180   : > { %v387_v30 = vmul.f32 %v904_v29, %v371_v10  ;;  %v402_v31 = vadd.f32 %v761_v27, %v394_v28 }
 0x182   : > { %v395_v32 = vmul.f32 %v760_v25, %v387_v30  ;;  %793 = vmatprep.mubr.msk.f32.mxu0 %vm360_vm0, %v402_v31 }
 0x184   : > { %v403_v33 = vadd.f32 %v761_v27, %v395_v32 }
 0x186   : > { %794 = vmatmul.mubr.msk.f32.vlgmr.msra.gmra.mxu0 %vm360_vm0, %v403_v33 }
 0x246   : > { %v795_v35 = vpop.f32.mrf.mxu0 }
 0x247   : > { %v493_v36 = vadd.f32 %v795_v35, %v762_v34 }
 0x248   : > { %v487_v37 = vpop.f32.mrf.mxu0 }
 0x249   : > { %497 = vst.msk [vmem:[%s337_s3 + $0x8] sm:$0xff] %vm360_vm0, %v493_v36  ;;  %v488_v38 = vadd.f32 %v762_v34, %v487_v37  ;;  %502 = vrot.lane.b32.xlu1 %v493_v36, %s1121_s27 }
 0x24b   : > { %496 = vst.msk [vmem:[%s337_s3] sm:$0xff] %vm360_vm0, %v488_v38  ;;  %500 = vrot.lane.b32.xlu0 %v488_v38, %s1121_s27 }
 0x24c   : > { %972 = shalt.err (!%p969_p2)
}
 0x24d   : > { %s973_s20 = scalar_lea.hbm %s1339_s15, 256  ;;  %s977_s18 = scalar_lea.hbm %s1518_s16, 1024 }
 0x24e   : > { %p974_p6 = scmp.ne.s32.totalorder %s1339_s15, %s973_s20  ;;  %p978_p11 = scmp.lt.s32.totalorder %s1339_s15, %s1518_s16 }
 0x24f   : > { %p979_p10 = scmp.lt.s32.totalorder %s977_s18, %s973_s20 }
 0x250   : > { %p975_p7 = pnand %p974_p6, %p1257_p12 }
 0x251   : > { %p980_p13 = por %p979_p10, %p978_p11 }
 0x252   : > { %p976_p9 = pneg %p975_p7 }
 0x254   : > { %p981_p1 = pnand %p980_p13, %p976_p9 }
 0x256   : > { %984 = shalt.err (!%p981_p1)
}
 0x257   : > { %s1123_s28 = smov 128   ;;  %s1124_s6 = smov 8  }
 0x258   : > { %802 = dma.vmem_to_hbm [thread:$0]  (%p1257_p12), %s1332_s7, 256, %s1339_s15, %s517_s5, %s1123_s28, %s1123_s28, %s1124_s6  }
 0x259   : > { %s1125_s11 = smov 64   ;;  %s344_s12 = scalar_lea.vmem [#allocation8], %s1300_s14 }
 0x25a   : > { %508 = vrot.lane.b32.xlu1 %v488_v38, %s1125_s11  ;;  %s560_s13 = sshll.u32 %s344_s12, 4  ;;  %s521_s19 = sand.u32 1, %s1209_s9   ;;  %s1370_s13 = int_to_ptr.vmem [resolvable:$true] %s560_s13 }
 0x25b   : > { %s1519_s17 = sld [smem:[#allocation22_spill]]  ;;  %s1381_s7 = scalar_lea.vmem [#allocation10], %s1300_s14 }
 0x25c   : > { %s578_s9 = sshll.u32 %s1381_s7, 4  ;;  %s1384_s15 = scalar_lea.sflag [#allocation9], %s521_s19  ;;  %s1414_s9 = int_to_ptr.vmem [resolvable:$true] %s578_s9 }
 0x25d   : > { %s985_s5 = scalar_lea.vmem %s1370_s13, 256  ;;  %s1126_s18 = smov [#allocation8]  }
 0x25e   : > { %510 = vrot.lane.b32.xlu1 %v493_v36, %s1125_s11  ;;  %p986_p4 = scmp.ne.s32.totalorder %s1370_s13, %s985_s5  ;;  %s989_s3 = sshll.u32 %s1126_s18, 4  ;;  %s990_s3 = int_to_ptr.vmem [resolvable:$false] %s989_s3 }
 0x25f   : > { %s991_s27 = scalar_lea.vmem %s990_s3, 512  ;;  %p992_p3 = scmp.lt.s32.totalorder %s1370_s13, %s990_s3 }
 0x260   : > { %p987_p8 = pnand %p986_p4, %p1257_p12  ;;  %p993_p5 = scmp.lt.s32.totalorder %s991_s27, %s985_s5 }
 0x261   : > { %s1377_s23 = scalar_lea.hbm %s1519_s17, %s1330_s29 }
 0x262   : > { %p988_p0 = pneg %p987_p8  ;;  %p994_p2 = por %p993_p5, %p992_p3 }
 0x264   : > { %p995_p6 = pnand %p994_p2, %p988_p0 }
 0x2bb   : > { %v503_v39 = vpop.permute.xlu1 %502 }
 0x2bc   : > { %507 = vst.msk [vmem:[%s344_s12 + $0x8] sm:$0xff] %vm360_vm0, %v503_v39 }
 0x2bd   : > { %v501_v40 = vpop.permute.xlu0 %500 }
 0x2be   : > { %506 = vst.msk [vmem:[%s344_s12] sm:$0xff] %vm360_vm0, %v501_v40 }
 0x2cc   : > { %v509_v41 = vpop.permute.xlu1 %508 }
 0x2cd   : > { %998 = shalt.err (!%p995_p6)
}
 0x2ce   : > { %s999_s14 = scalar_lea.hbm %s1377_s23, 256  ;;  %s1003_s19 = scalar_lea.hbm %s1519_s17, 1024 }
 0x2cf   : > { %p1000_p7 = scmp.ne.s32.totalorder %s1377_s23, %s999_s14  ;;  %p1004_p10 = scmp.lt.s32.totalorder %s1377_s23, %s1519_s17 }
 0x2d0   : > { %p1005_p13 = scmp.lt.s32.totalorder %s1003_s19, %s999_s14 }
 0x2d1   : > { %p1001_p9 = pnand %p1000_p7, %p1257_p12 }
 0x2d2   : > { %p1006_p1 = por %p1005_p13, %p1004_p10 }
 0x2d3   : > { %p1002_p11 = pneg %p1001_p9 }
 0x2d5   : > { %p1007_p4 = pnand %p1006_p1, %p1002_p11 }
 0x2d7   : > { %1010 = shalt.err (!%p1007_p4)
}
 0x2d8   : > { %803 = dma.vmem_to_hbm [thread:$0]  (%p1257_p12), %s1370_s13, 256, %s1377_s23, %s1384_s15, %s1123_s28, %s1123_s28, %s1124_s6   ;;  %v511_v42 = vpop.permute.xlu1 %510 }
 0x2d9   : > { %514 = vst.msk [vmem:[%s1381_s7] sm:$0xff] %vm360_vm0, %v509_v41  ;;  %s1520_s3 = sld [smem:[#allocation23_spill]]  ;;  %515 = vst.msk [vmem:[%s1381_s7 + $0x8] sm:$0xff] %vm360_vm0, %v511_v42  ;;  %s1011_s14 = scalar_lea.vmem %s1414_s9, 256 }
 0x2da   : > { %p1012_p8 = scmp.ne.s32.totalorder %s1414_s9, %s1011_s14  ;;  %s1127_s13 = smov [#allocation10]  }
 0x2db   : > { %s1015_s23 = sshll.u32 %s1127_s13, 4  ;;  %s1016_s23 = int_to_ptr.vmem [resolvable:$false] %s1015_s23 }
 0x2dc   : > { %p1013_p0 = pnand %p1012_p8, %p1257_p12  ;;  %s1017_s11 = scalar_lea.vmem %s1016_s23, 512 }
 0x2dd   : > { %p1018_p5 = scmp.lt.s32.totalorder %s1414_s9, %s1016_s23  ;;  %p1019_p2 = scmp.lt.s32.totalorder %s1017_s11, %s1011_s14 }
 0x2de   : > { %p1014_p3 = pneg %p1013_p0 }
 0x2df   : > { %s1420_s27 = scalar_lea.hbm %s1520_s3, %s1330_s29  ;;  %p1020_p6 = por %p1019_p2, %p1018_p5 }
 0x2e1   : > { %p1021_p7 = pnand %p1020_p6, %p1014_p3 }
 0x2e3   : > { %1024 = shalt.err (!%p1021_p7)
}
 0x2e4   : > { %s1025_s29 = scalar_lea.hbm %s1420_s27, 256  ;;  %s1029_s19 = scalar_lea.hbm %s1520_s3, 1024 }
 0x2e5   : > { %p1026_p9 = scmp.ne.s32.totalorder %s1420_s27, %s1025_s29  ;;  %p1030_p13 = scmp.lt.s32.totalorder %s1420_s27, %s1520_s3 }
 0x2e6   : > { %p1031_p1 = scmp.lt.s32.totalorder %s1029_s19, %s1025_s29 }
 0x2e7   : > { %p1027_p11 = pnand %p1026_p9, %p1257_p12 }
 0x2e8   : > { %p1032_p4 = por %p1031_p1, %p1030_p13 }
 0x2e9   : > { %p1028_p10 = pneg %p1027_p11 }
 0x2eb   : > { %p1033_p8 = pnand %p1032_p4, %p1028_p10 }
 0x2ed   : > { %1036 = shalt.err (!%p1033_p8)
}
 0x2ee   : > { %804 = dma.vmem_to_hbm [thread:$0]  (%p1257_p12), %s1414_s9, 256, %s1420_s27, %s1384_s15, %s1123_s28, %s1123_s28, %s1124_s6  }
 0x2ef PF: > { %s1521_s5 = sld [smem:[#allocation15_spill]]  ;;  %p829_p0 = scmp.ge.s32.totalorder %s1115_s8, 2 }
 0x2f0   : > { %s1522_s18 = sld [smem:[#allocation17_spill]] }
 0x2f5   : > { %s593_s14 = sand.u32 1, %s1521_s5  }
 0x2f6   : > { %p1523_p3 = scmp.ne.s32.totalorder %s1522_s18, 0  ;;  %s594_s13 = scalar_lea.sflag [#allocation4], %s593_s14 }
 0x2f8   : > { %p817_p5 = pnand %p829_p0, %p1523_p3 }
 0x2fa   : > { %p818_p2 = pneg %p817_p5 }
 0x2fc   : > { %1078 = dma.done.wait (%p818_p2), %s594_s13, 256  }
 0x2fd   : > { %1080 = vsyncadd (%p818_p2), %s594_s13, 4294967040  ;;  %s1524_s21 = sadd.s32 4294967294, %s1115_s8  }
 0x2fe   : > { %s602_s23 = sand.u32 1, %s1524_s21  }
 0x2ff   : > { %s603_s11 = scalar_lea.sflag [#allocation9], %s602_s23 }
 0x300   : > { %1082 = dma.done.wait (%p818_p2), %s603_s11, 512  }
 0x301   : > { %1084 = vsyncadd (%p818_p2), %s603_s11, 4294966784  ;;  %s28_s8 = sadd.s32 1, %s1115_s8   ;;  %s1525_s28 = smov %s1274_s24 }
 0x302   : > { %p25_p12 = scmp.ge.s32.totalorder %s28_s8, 6   ;;  %s1526_s27 = sld [smem:[#allocation16_spill]] }
 0x303   : > { %s1527_s29 = sld [smem:[#allocation18_spill]]  ;;  %s1528_s24 = smov %s1091_s25 }
 0x304   : > { %s1529_s25 = smov %s1095_s26  ;;  %s1530_s26 = smov %s1525_s28 }
 0x305   : > { %s1531_s28 = smov %s1111_s30  ;;  %s1532_s30 = smov %s1538_s22 }
 0x306   :  { %27 = sbr.rel (!%p25_p12) target bundleno = 15 (0xf), region = 121 }
 0x30b   :  { %617 = vsyncpa [#allocation3], 1 }
 0x30c   :  { %619 = vsyncpa [#allocation3 + $0x1], 1 }
 0x30d   :  { %620 = vsyncpa [#allocation6], 1 }
 0x30e   :  { %621 = vsyncpa [#allocation4], 1 }
 0x30f   :  { %623 = vsyncpa [#allocation4 + $0x1], 1 }
 0x310   :  { %624 = vsyncpa [#allocation9], 1 }
 0x311   :  { %626 = vsyncpa [#allocation9 + $0x1], 1 }

</bundles_post_ra>
